<compile_context>
chip_gen: v7x
topology: tpu7x:2x2x1
jax: 0.10.0
libtpu: 0.0.40
codegen_flags: <defaults>
</compile_context>

<pallas_src>
import jax
import jax.numpy as jnp
from jax.experimental import pallas as pl
from jax.experimental.pallas import tpu as pltpu


def _round_up(x: int, m: int) -> int:
    return ((x + m - 1) // m) * m


def _linear_f32out_kernel(x_ref, w_ref, b_ref, o_ref):
    """f32 output: accumulate directly into the resident output block.

    x_ref: (tm, tk) activation tile (compute dtype, e.g. bf16)
    w_ref: (tk, tn) weight tile, already (in, out) layout
    b_ref: (1,  tn) f32 bias tile
    o_ref: (tm, tn) f32 output tile (block index constant across k -> resident)
    """
    k = pl.program_id(2)

    @pl.when(k == 0)
    def _():
        # Seed the accumulator with the bias (added exactly once).
        o_ref[...] = jnp.broadcast_to(b_ref[...], o_ref.shape)

    o_ref[...] += jnp.dot(x_ref[...], w_ref[...],
                          preferred_element_type=jnp.float32)


def _linear_acc_kernel(x_ref, w_ref, b_ref, o_ref, acc_ref):
    """Narrow-output variant: f32 VMEM scratch accumulator, cast on finalize."""
    k = pl.program_id(2)

    @pl.when(k == 0)
    def _():
        acc_ref[...] = jnp.zeros_like(acc_ref)

    acc_ref[...] += jnp.dot(x_ref[...], w_ref[...],
                            preferred_element_type=jnp.float32)

    @pl.when(k == pl.num_programs(2) - 1)
    def _():
        o_ref[...] = (acc_ref[...] + b_ref[...]).astype(o_ref.dtype)


def identity_model_forward(x, weight, bias, *, tm=512, tn=512, tk=1024,
                           compute_dtype=jnp.bfloat16, force_pallas=False):
    """PyTorch nn.Linear semantics: y = x @ weight.T + bias.

    x:      (M, K) activations
    weight: (N, K) PyTorch layout (out_features, in_features)
    bias:   (N,)
    """
    M, K = x.shape
    N, K2 = weight.shape
    assert K == K2, "weight in_features must match x feature dim"
    out_dtype = x.dtype

    # Tiny-shape bypass: at demo-class sizes the kernel is pure launch/DMA
    # overhead and plain XLA is strictly faster.
    if not force_pallas and (M < 8 or M * N * K < (1 << 21)):
        return (x @ weight.T + bias).astype(out_dtype)

    # One-time layout / dtype prep (amortized: weight/bias are static params).
    x_c = x.astype(compute_dtype)
    w_kn = weight.T.astype(compute_dtype)          # (K, N): canonical contraction
    b_f32 = bias.astype(jnp.float32)

    in_bytes = jnp.dtype(compute_dtype).itemsize
    out_bytes = jnp.dtype(out_dtype).itemsize
    sub = 16 if in_bytes == 2 else 8               # sublane multiple for packing

    # Lane/sublane-aligned padded dims, then clamp tiles to them.
    Mp = _round_up(M, sub)
    Np = _round_up(N, 128)
    Kp = _round_up(K, 128)
    tm = min(tm, Mp)
    tn = min(tn, Np)
    tk = min(tk, Kp)

    # v7x has 2 TensorCores: make sure the parallel axes provide >= 2 blocks
    # when we can do so while keeping lane/sublane-dense tiles.
    if (Mp // tm) * (Np // tn) < 2:
        if tn >= 256 and tn % 256 == 0:
            tn //= 2
        elif tm >= 2 * sub and tm % (2 * sub) == 0:
            tm //= 2

    # Final padded extents must be tile multiples.
    Mp = _round_up(Mp, tm)
    Np = _round_up(Np, tn)
    Kp = _round_up(Kp, tk)

    if (Mp, Kp) != (M, K):
        x_c = jnp.pad(x_c, ((0, Mp - M), (0, Kp - K)))
    if (Kp, Np) != (K, N):
        w_kn = jnp.pad(w_kn, ((0, Kp - K), (0, Np - N)))
    b2d = (jnp.pad(b_f32, (0, Np - N)) if Np != N else b_f32).reshape(1, Np)

    grid = (Mp // tm, Np // tn, Kp // tk)

    # Pick the kernel: f32 output accumulates in place; otherwise use f32 scratch.
    use_acc = jnp.dtype(out_dtype) != jnp.dtype(jnp.float32)
    kernel = _linear_acc_kernel if use_acc else _linear_f32out_kernel
    scratch = [pltpu.VMEM((tm, tn), jnp.float32)] if use_acc else []

    # Double-buffered working set -> explicit scoped-VMEM limit (cap for v7x).
    working_set = (2 * (tm * tk + tk * tn) * in_bytes
                   + 2 * tm * tn * out_bytes
                   + 2 * tn * 4
                   + (tm * tn * 4 if use_acc else 0))
    vmem_limit = min(48 << 20, max(32 << 20, 2 * working_set))

    # Advisory cost: tiled traffic (x re-read per N tile, weight per M tile).
    cost = pl.CostEstimate(
        flops=2 * Mp * Np * Kp,
        transcendentals=0,
        bytes_accessed=(Mp * Kp * in_bytes * (Np // tn)
                        + Kp * Np * in_bytes * (Mp // tm)
                        + Mp * Np * out_bytes
                        + Np * 4),
    )

    out = pl.pallas_call(
        kernel,
        out_shape=jax.ShapeDtypeStruct((Mp, Np), out_dtype),
        grid=grid,
        in_specs=[
            pl.BlockSpec((tm, tk), lambda i, j, k: (i, k)),   # x tile
            pl.BlockSpec((tk, tn), lambda i, j, k: (k, j)),   # weight (K, N) tile
            pl.BlockSpec((1, tn), lambda i, j, k: (0, j)),    # bias row
        ],
        out_specs=pl.BlockSpec((tm, tn), lambda i, j, k: (i, j)),
        scratch_shapes=scratch,
        compiler_params=pltpu.CompilerParams(
            dimension_semantics=("parallel", "parallel", "arbitrary"),
            vmem_limit_bytes=vmem_limit,
        ),
        cost_estimate=cost,
    )(x_c, w_kn, b2d)

    return out[:M, :N] if (Mp, Np) != (M, N) else out


if __name__ == "__main__":
    key = jax.random.PRNGKey(0)

    # --- Demo shape consistent with the module: batch=2, input_size=32. ---
    B, D = 2, 32
    k_x, k_w, k_b, k_x2, k_w2, k_b2 = jax.random.split(key, 6)
    bound = 1.0 / (D ** 0.5)
    x = jax.random.normal(k_x, (B, D), dtype=jnp.float32)
    weight = jax.random.uniform(k_w, (D, D), minval=-bound, maxval=bound,
                                dtype=jnp.float32)
    bias = jax.random.uniform(k_b, (D,), minval=-bound, maxval=bound,
                              dtype=jnp.float32)

    # Force the Pallas path (the tiny-shape XLA bypass would otherwise fire)
    # so the kernel itself is compiled and executed.
    y = identity_model_forward(x, weight, bias, force_pallas=True)
    jax.block_until_ready(y)
    y_ref = x @ weight.T + bias
    # bf16 MXU operands with f32 accumulation -> ~1e-2 relative error budget.
    assert jnp.allclose(y, y_ref, atol=5e-2, rtol=5e-2), "mismatch (demo shape)"

    # --- Second check: non-tile-aligned dims, multi-tile N and multi-step K
    #     (exercises padding, the K reduction loop, and the 2-block split). ---
    M2, D2 = 64, 640
    bound2 = 1.0 / (D2 ** 0.5)
    x2 = jax.random.normal(k_x2, (M2, D2), dtype=jnp.float32)
    w2 = jax.random.uniform(k_w2, (D2, D2), minval=-bound2, maxval=bound2,
                            dtype=jnp.float32)
    b2 = jax.random.uniform(k_b2, (D2,), minval=-bound2, maxval=bound2,
                            dtype=jnp.float32)
    y2 = identity_model_forward(x2, w2, b2, tk=256, force_pallas=True)
    jax.block_until_ready(y2)
    y2_ref = x2 @ w2.T + b2
    assert jnp.allclose(y2, y2_ref, atol=5e-2, rtol=5e-2), "mismatch (tiled shape)"

    print("KERNEL_OK")
</pallas_src>

<mosaic_0001>
module attributes {stable_mosaic.version = 11 : i64} {
  func.func @_linear_f32out_kernel(%arg0: i32, %arg1: i32, %arg2: i32, %arg3: memref<16x128xbf16, #tpu.memory_space<vmem>>, %arg4: memref<128x128xbf16, #tpu.memory_space<vmem>>, %arg5: memref<1x128xf32, #tpu.memory_space<vmem>>, %arg6: memref<16x128xf32, #tpu.memory_space<vmem>>) attributes {dimension_semantics = [#tpu.dimension_semantics<parallel>, #tpu.dimension_semantics<parallel>, #tpu.dimension_semantics<arbitrary>], iteration_bounds = array<i64: 1, 1, 1>, scalar_prefetch = 0 : i64, scratch_operands = 0 : i64, tpu.core_type = #tpu.core_type<tc>, window_params = [{transform_indices = @transform_0, window_bounds = array<i64: 16, 128>}, {transform_indices = @transform_1, window_bounds = array<i64: 128, 128>}, {transform_indices = @transform_2, window_bounds = array<i64: 1, 128>}, {transform_indices = @transform_3, window_bounds = array<i64: 16, 128>}]} {
    %c0_i32 = arith.constant 0 : i32
    %0 = arith.cmpi eq, %arg2, %c0_i32 : i32
    %1 = arith.extui %0 : i1 to i32
    %c0_i32_0 = arith.constant 0 : i32
    %2 = arith.cmpi ne, %1, %c0_i32_0 : i32
    scf.if %2 {
      %c0_8 = arith.constant 0 : index
      %c0_9 = arith.constant 0 : index
      %9 = vector.load %arg5[%c0_8, %c0_9] : memref<1x128xf32, #tpu.memory_space<vmem>>, vector<1x128xf32>
      %10 = vector.shape_cast %9 : vector<1x128xf32> to vector<1x128xf32>
      %11 = vector.broadcast %10 : vector<1x128xf32> to vector<16x128xf32>
      %c0_10 = arith.constant 0 : index
      %c0_11 = arith.constant 0 : index
      %12 = vector.load %arg6[%c0_10, %c0_11] : memref<16x128xf32, #tpu.memory_space<vmem>>, vector<16x128xf32>
      tpu.vector_store %arg6[%c0_10, %c0_11], %11 {strides = array<i32>} : memref<16x128xf32, #tpu.memory_space<vmem>>, vector<16x128xf32>,
    } else {
    }
    %c0 = arith.constant 0 : index
    %c0_1 = arith.constant 0 : index
    %3 = vector.load %arg6[%c0, %c0_1] : memref<16x128xf32, #tpu.memory_space<vmem>>, vector<16x128xf32>
    %c0_2 = arith.constant 0 : index
    %c0_3 = arith.constant 0 : index
    %4 = vector.load %arg3[%c0_2, %c0_3] : memref<16x128xbf16, #tpu.memory_space<vmem>>, vector<16x128xbf16>
    %c0_4 = arith.constant 0 : index
    %c0_5 = arith.constant 0 : index
    %5 = vector.load %arg4[%c0_4, %c0_5] : memref<128x128xbf16, #tpu.memory_space<vmem>>, vector<128x128xbf16>
    %cst = arith.constant dense<0.000000e+00> : vector<16x128xf32>
    %6 = tpu.matmul %4, %5, %cst {dimension_numbers = #tpu.dot_dimension_numbers<[1], [0], [0], [1], [0, 0, 1, 1], [], []>} : vector<16x128xbf16>, vector<128x128xbf16>, vector<16x128xf32> -> vector<16x128xf32>
    %7 = arith.addf %3, %6 : vector<16x128xf32>
    %c0_6 = arith.constant 0 : index
    %c0_7 = arith.constant 0 : index
    %8 = vector.load %arg6[%c0_6, %c0_7] : memref<16x128xf32, #tpu.memory_space<vmem>>, vector<16x128xf32>
    tpu.vector_store %arg6[%c0_6, %c0_7], %7 {strides = array<i32>} : memref<16x128xf32, #tpu.memory_space<vmem>>, vector<16x128xf32>,
    return
  }
  func.func @transform_0(%arg0: i32, %arg1: i32, %arg2: i32) -> (i32, i32) {
    %c0_i32 = arith.constant 0 : i32
    return %arg0, %arg2 : i32, i32
  }
  func.func @transform_1(%arg0: i32, %arg1: i32, %arg2: i32) -> (i32, i32) {
    %c0_i32 = arith.constant 0 : i32
    return %arg2, %arg1 : i32, i32
  }
  func.func @transform_2(%arg0: i32, %arg1: i32, %arg2: i32) -> (i32, i32) {
    %c0_i32 = arith.constant 0 : i32
    %c0_i32_0 = arith.constant 0 : i32
    return %c0_i32, %arg1 : i32, i32
  }
  func.func @transform_3(%arg0: i32, %arg1: i32, %arg2: i32) -> (i32, i32) {
    %c0_i32 = arith.constant 0 : i32
    return %arg0, %arg1 : i32, i32
  }
}

</mosaic_0001>

<bundles_post_ra>
// kernel: tpu_custom_call.1
= control target key start
LH: loop header
LB: loop body
LE: loop exit
PB: predicated region body
PF: predicated region fallthrough
CT: control target
= control target key end

     0   :  { %8 = vsyncpa [#allocation3], 0  ;;  %s391_s0 = inlined_call_operand.hbm [shape: bf16[16,128], index: 0, kind: input, shape index: {}]   ;;  %s392_s1 = inlined_call_operand.hbm [shape: bf16[128,128], index: 1, kind: input, shape index: {}]   ;;  %s393_s2 = inlined_call_operand.vmem [shape: f32[1,128], index: 2, kind: input, shape index: {}]   ;;  %s394_s3 = inlined_call_operand.hbm [shape: f32[16,128], index: 3, kind: output, shape index: {}]  }
   0x1   :  { %9 = vsyncpa [#allocation6], 0 }
   0x2   :  { %10 = vsyncpa [#allocation4], 0  ;;  %s323_s12 = smov [#allocation2]   ;;  %s251_s16 = scalar_lea.hbm %s391_s0, 128 }
   0x3   :  { %s16_s13 = sshll.u32 %s323_s12, 4  ;;  %p252_p0 = scmp.ne.s32.totalorder %s391_s0, %s251_s16  ;;  %s17_s13 = int_to_ptr.vmem [resolvable:$true] %s16_s13 }
   0x4   :  { %p255_p1 = scmp.lt.u32.totalorder %s251_s16, %s391_s0 }
   0x6   :  { %p257_p2 = pnand %p255_p1, %p252_p0 }
   0x8   :  { %260 = shalt.err (!%p257_p2)
}
   0x9   :  { %s261_s21 = scalar_lea.vmem %s17_s13, 128  ;;  %p266_p4 = scmp.lt.s32.totalorder %s17_s13, %s17_s13 }
   0xa   :  { %p262_p3 = scmp.ne.s32.totalorder %s17_s13, %s261_s21  ;;  %p267_p5 = scmp.lt.s32.totalorder %s261_s21, %s261_s21 }
   0xc   :  { %p268_p6 = por %p267_p5, %p266_p4 }
   0xe   :  { %p269_p7 = pnand %p268_p6, %p262_p3 }
  0x10   :  { %272 = shalt.err (!%p269_p7)
}
  0x11   :  { %s324_s22 = smov 64   ;;  %s325_s23 = smov 4  }
  0x12   :  { %22 = dma.hbm_to_vmem [thread:$0]  %s391_s0, 128, %s17_s13, [#allocation3], %s324_s22, %s324_s22, %s325_s23  }
  0x13   :  { %s326_s26 = smov [#allocation5]   ;;  %s273_s30 = scalar_lea.hbm %s392_s1, 1024 }
  0x14   :  { %s28_s27 = sshll.u32 %s326_s26, 4  ;;  %p274_p8 = scmp.ne.s32.totalorder %s392_s1, %s273_s30  ;;  %s29_s27 = int_to_ptr.vmem [resolvable:$true] %s28_s27 }
  0x15   :  { %p277_p9 = scmp.lt.u32.totalorder %s273_s30, %s392_s1 }
  0x17   :  { %p279_p10 = pnand %p277_p9, %p274_p8 }
  0x19   :  { %282 = shalt.err (!%p279_p10)
}
  0x1a   :  { %s283_s8 = scalar_lea.vmem %s29_s27, 1024  ;;  %p288_p12 = scmp.lt.s32.totalorder %s29_s27, %s29_s27 }
  0x1b   :  { %p284_p11 = scmp.ne.s32.totalorder %s29_s27, %s283_s8  ;;  %p289_p13 = scmp.lt.s32.totalorder %s283_s8, %s283_s8 }
  0x1d   :  { %p290_p0 = por %p289_p13, %p288_p12 }
  0x1f   :  { %p291_p1 = pnand %p290_p0, %p284_p11 }
  0x21   :  { %294 = shalt.err (!%p291_p1)
}
  0x22   :  { %34 = dma.hbm_to_vmem [thread:$0]  %s392_s1, 1024, %s29_s27, [#allocation6], %s324_s22, %s324_s22, %s325_s23  }
  0x23   :  { %317 = dma.done.wait [#allocation3], 128  }
  0x24   :  { %318 = vsyncadd [#allocation3], 4294967168 }
  0x25   :  { %319 = dma.done.wait [#allocation6], 1024  }
  0x26   :  { %320 = vsyncadd [#allocation6], 4294966272  ;;  %v327_v0 = vmov 0.0   ;;  %vm328_vm0 = vmmov 0   ;;  %v242_v1 = vld [vmem:[#allocation5] sm:$0xff]   ;;  %v243_v2 = vld [vmem:[#allocation5 + $0x8] sm:$0xff]  }
  0x27   :  { %213 = vmatprep.subr.bf16.mxu0 %v327_v0  ;;  %229 = vmatprep.mubr.msk.bf16.mxu0 %vm328_vm0, %v327_v0  ;;  %v244_v3 = vld [vmem:[#allocation5 + $0x10] sm:$0xff]   ;;  %v245_v4 = vld [vmem:[#allocation5 + $0x18] sm:$0xff]   ;;  %v246_v5 = vld [vmem:[#allocation5 + $0x20] sm:$0xff]   ;;  %s329_s11 = smov [#allocation7]  }
  0x28   :  { %214 = vmatpush3.bf16.msra.mxu0 %v242_v1  ;;  %v247_v6 = vld [vmem:[#allocation5 + $0x28] sm:$0xff]   ;;  %v248_v7 = vld [vmem:[#allocation5 + $0x30] sm:$0xff]   ;;  %v249_v8 = vld [vmem:[#allocation5 + $0x38] sm:$0xff]   ;;  %s181_s12 = sshll.u32 %s329_s11, 4  ;;  %s182_s12 = int_to_ptr.vmem [resolvable:$true] %s181_s12 }
  0x29   :  { %215 = vmatprep.subr.bf16.mxu0 %v327_v0  ;;  %v250_v9 = vld [vmem:[#allocation2] sm:$0xff]   ;;  %s295_s13 = scalar_lea.vmem %s182_s12, 256  ;;  %p300_p3 = scmp.lt.s32.totalorder %s182_s12, %s182_s12 }
  0x2a   :  { %v194_v10 = vld [vmem:[%s393_s2] ss:$0 sm:$0xff]  ;;  %p296_p2 = scmp.ne.s32.totalorder %s182_s12, %s295_s13  ;;  %p301_p4 = scmp.lt.s32.totalorder %s295_s13, %s295_s13 }
  0x2c   :  { %216 = vmatpush3.bf16.msra.mxu0 %v243_v2  ;;  %p302_p5 = por %p301_p4, %p300_p3 }
  0x2d   :  { %217 = vmatprep.subr.bf16.mxu0 %v327_v0 }
  0x2e   :  { %p303_p6 = pnand %p302_p5, %p296_p2 }
  0x30   :  { %218 = vmatpush3.bf16.msra.mxu0 %v244_v3 }
  0x31   :  { %219 = vmatprep.subr.bf16.mxu0 %v327_v0 }
  0x34   :  { %220 = vmatpush3.bf16.msra.mxu0 %v245_v4 }
  0x35   :  { %221 = vmatprep.subr.bf16.mxu0 %v327_v0 }
  0x38   :  { %222 = vmatpush3.bf16.msra.mxu0 %v246_v5 }
  0x39   :  { %223 = vmatprep.subr.bf16.mxu0 %v327_v0 }
  0x3c   :  { %224 = vmatpush3.bf16.msra.mxu0 %v247_v6 }
  0x3d   :  { %225 = vmatprep.subr.bf16.mxu0 %v327_v0 }
  0x40   :  { %226 = vmatpush3.bf16.msra.mxu0 %v248_v7 }
  0x41   :  { %227 = vmatprep.subr.bf16.mxu0 %v327_v0 }
  0x44   :  { %228 = vmatpush3.bf16.msra.mxu0 %v249_v8 }
  0x47   :  { %230 = vmatmul.mubr.bf16.vlgmr.msra.gmra.mrb[0].mxu0 %v250_v9 }
 0x11a   :  { %v165_v11 = vpop.f32.mrb[0].mxu0 }
 0x11b   :  { %v172_v12 = vadd.f32 %v194_v10, %v165_v11  ;;  %v231_v13 = vpop.f32.mrb[1].mxu0 }
 0x11c   :  { %v168_v14 = vpop.f32.mrb[2].mxu0 }
 0x11d   :  { %174 = vst [vmem:[#allocation7] sm:$0xff] %v172_v12  ;;  %v173_v15 = vadd.f32 %v194_v10, %v168_v14  ;;  %v232_v16 = vpop.f32.mrb[3].mxu0 }
 0x11f   :  { %175 = vst [vmem:[#allocation7 + $0x8] sm:$0xff] %v173_v15 }
 0x120   :  { %306 = shalt.err (!%p303_p6)
}
 0x121   :  { %s307_s15 = scalar_lea.hbm %s394_s3, 256 }
 0x122   :  { %p308_p7 = scmp.ne.s32.totalorder %s394_s3, %s307_s15  ;;  %p311_p8 = scmp.lt.u32.totalorder %s307_s15, %s394_s3 }
 0x124   :  { %p313_p9 = pnand %p311_p8, %p308_p7 }
 0x126   :  { %316 = shalt.err (!%p313_p9)
}
 0x127   :  { %s330_s20 = smov 128   ;;  %s331_s21 = smov 8  }
 0x128   :  { %187 = dma.vmem_to_hbm [thread:$0]  %s182_s12, 256, %s394_s3, [#allocation4], %s330_s20, %s330_s20, %s331_s21  }
 0x129   :  { %321 = dma.done.wait [#allocation4], 256  }
 0x12a   :  { %322 = vsyncadd [#allocation4], 4294967040 }
 0x12b   :  { %191 = vsyncpa [#allocation3], 1 }
 0x12c   :  { %192 = vsyncpa [#allocation6], 1 }
 0x12d   :  { %193 = vsyncpa [#allocation4], 1 }

</bundles_post_ra>
